<compile_context>
chip_gen: v7x
topology: tpu7x:2x2x1
jax: 0.10.0
libtpu: 0.0.40
codegen_flags: <defaults>
</compile_context>

<pallas_src>
import functools
import math

import jax
import jax.numpy as jnp
from jax import lax
from jax.experimental import pallas as pl
from jax.experimental.pallas import tpu as pltpu

_LN_EPS = 1e-5                       # nn.LayerNorm default eps
_VMEM_LIMIT = 48 * 1024 * 1024       # headroom vs v7x's 64 MiB physical VMEM
_MAX_ROW_TILE = 1024                 # rows per tile (large multiple of 8)


def _round_up(x, m):
    return (x + m - 1) // m * m


def _row_tile(n_rows):
    if n_rows >= _MAX_ROW_TILE:
        return _MAX_ROW_TILE
    return _round_up(n_rows, 8)


def _pad_rows(x, n_rows_padded):
    pad = n_rows_padded - x.shape[0]
    return x if pad == 0 else jnp.pad(x, ((0, pad), (0, 0)))


def _row_compiler_params():
    return pltpu.CompilerParams(dimension_semantics=("parallel",),
                                vmem_limit_bytes=_VMEM_LIMIT)


# ------------------------------- kernels ----------------------------------- #

def _pe_add_kernel(pos_ref, x_ref, scale_ref, phase_ref, o_ref):
    # pos: (TR, 1)   x: (TR, D)   scale/phase: (1, D)   o: (TR, D)
    # scale = [div, div], phase = [0, pi/2] so sin(pos*scale + phase) equals
    # cat([sin(pos*div), cos(pos*div)], -1) -> single unmasked full-tile store.
    z = pos_ref[...] * scale_ref[...] + phase_ref[...]
    o_ref[...] = x_ref[...] + jnp.sin(z)


def _linear_kernel(x_ref, w_ref, b_ref, o_ref, *, relu):
    y = jnp.dot(x_ref[...], w_ref[...],
                preferred_element_type=jnp.float32) + b_ref[...]
    if relu:
        y = jnp.maximum(y, 0.0)
    o_ref[...] = y


def _attn_kernel(q_ref, k_ref, v_ref, o_ref, *, scale):
    q = q_ref[...]                                    # (S, Dh)
    k = k_ref[...]
    v = v_ref[...]
    s = lax.dot_general(q, k, (((1,), (1,)), ((), ())),
                        preferred_element_type=jnp.float32) * scale   # (S, S)
    m = jnp.max(s, axis=-1, keepdims=True)
    p = jnp.exp(s - m)
    p = p / jnp.sum(p, axis=-1, keepdims=True)
    o_ref[...] = jnp.dot(p, v, preferred_element_type=jnp.float32)


def _add_ln_kernel(a_ref, b_ref, g_ref, beta_ref, o_ref):
    x = a_ref[...] + b_ref[...]
    mu = jnp.mean(x, axis=-1, keepdims=True)
    xc = x - mu
    var = jnp.mean(xc * xc, axis=-1, keepdims=True)
    o_ref[...] = xc * lax.rsqrt(var + _LN_EPS) * g_ref[...] + beta_ref[...]


def _add_ln_res_kernel(a_ref, b_ref, res_ref, g_ref, beta_ref, o_ref):
    x = a_ref[...] + b_ref[...]
    mu = jnp.mean(x, axis=-1, keepdims=True)
    xc = x - mu
    var = jnp.mean(xc * xc, axis=-1, keepdims=True)
    o_ref[...] = (xc * lax.rsqrt(var + _LN_EPS) * g_ref[...] + beta_ref[...]
                  + res_ref[...])


# ------------------------------- wrappers ----------------------------------- #

def pe_add(pos_rows, x_rows, pe_scale, pe_phase):
    """x + cat([sin(pos*div), cos(pos*div)], -1) on flattened (seq*batch, D) rows."""
    rows, d_model = x_rows.shape
    tr = _row_tile(rows)
    rows_p = _round_up(rows, tr)
    pos_rows = _pad_rows(pos_rows, rows_p)
    x_rows = _pad_rows(x_rows, rows_p)
    out = pl.pallas_call(
        _pe_add_kernel,
        out_shape=jax.ShapeDtypeStruct((rows_p, d_model), jnp.float32),
        grid=(rows_p // tr,),
        in_specs=[
            pl.BlockSpec((tr, 1), lambda i: (i, 0)),
            pl.BlockSpec((tr, d_model), lambda i: (i, 0)),
            pl.BlockSpec((1, d_model), lambda i: (0, 0)),   # resident
            pl.BlockSpec((1, d_model), lambda i: (0, 0)),   # resident
        ],
        out_specs=pl.BlockSpec((tr, d_model), lambda i: (i, 0)),
        compiler_params=_row_compiler_params(),
    )(pos_rows, x_rows, pe_scale, pe_phase)
    return out[:rows]


def linear(x_rows, w, b, relu=False):
    rows, d_in = x_rows.shape
    d_out = w.shape[1]
    tr = _row_tile(rows)
    rows_p = _round_up(rows, tr)
    x_rows = _pad_rows(x_rows, rows_p)
    out = pl.pallas_call(
        functools.partial(_linear_kernel, relu=relu),
        out_shape=jax.ShapeDtypeStruct((rows_p, d_out), jnp.float32),
        grid=(rows_p // tr,),
        in_specs=[
            pl.BlockSpec((tr, d_in), lambda i: (i, 0)),
            pl.BlockSpec((d_in, d_out), lambda i: (0, 0)),   # resident weight
            pl.BlockSpec((1, d_out), lambda i: (0, 0)),      # resident bias
        ],
        out_specs=pl.BlockSpec((tr, d_out), lambda i: (i, 0)),
        compiler_params=_row_compiler_params(),
    )(x_rows, w, b)
    return out[:rows]


def attention(q, k, v):
    bh, s, dh = q.shape
    spec = pl.BlockSpec((None, s, dh), lambda i: (i, 0, 0))
    return pl.pallas_call(
        functools.partial(_attn_kernel, scale=1.0 / math.sqrt(dh)),
        out_shape=jax.ShapeDtypeStruct((bh, s, dh), jnp.float32),
        grid=(bh,),
        in_specs=[spec, spec, spec],
        out_specs=spec,
        compiler_params=pltpu.CompilerParams(
            dimension_semantics=("parallel",),
            vmem_limit_bytes=_VMEM_LIMIT),
    )(q, k, v)


def add_layernorm(a_rows, b_rows, gamma, beta, residual=None):
    rows, d = a_rows.shape
    tr = _row_tile(rows)
    rows_p = _round_up(rows, tr)
    row_spec = pl.BlockSpec((tr, d), lambda i: (i, 0))
    vec_spec = pl.BlockSpec((1, d), lambda i: (0, 0))
    a_rows = _pad_rows(a_rows, rows_p)
    b_rows = _pad_rows(b_rows, rows_p)
    if residual is None:
        kernel = _add_ln_kernel
        operands = (a_rows, b_rows, gamma, beta)
        in_specs = [row_spec, row_spec, vec_spec, vec_spec]
    else:
        kernel = _add_ln_res_kernel
        operands = (a_rows, b_rows, _pad_rows(residual, rows_p), gamma, beta)
        in_specs = [row_spec, row_spec, row_spec, vec_spec, vec_spec]
    out = pl.pallas_call(
        kernel,
        out_shape=jax.ShapeDtypeStruct((rows_p, d), jnp.float32),
        grid=(rows_p // tr,),
        in_specs=in_specs,
        out_specs=row_spec,
        compiler_params=_row_compiler_params(),
    )(*operands)
    return out[:rows]


# ----------------------------- module forward ------------------------------- #

def encoder_layer(x_rows, p, seq, batch, num_heads):
    d_model = x_rows.shape[1]
    dh = d_model // num_heads

    qkv = linear(x_rows, p["w_qkv"], p["b_qkv"])                  # (S*B, 3D)
    qkv = qkv.reshape(seq, batch, 3, num_heads, dh)
    qkv = jnp.transpose(qkv, (2, 1, 3, 0, 4))                     # (3, B, H, S, dh)
    q = qkv[0].reshape(batch * num_heads, seq, dh)
    k = qkv[1].reshape(batch * num_heads, seq, dh)
    v = qkv[2].reshape(batch * num_heads, seq, dh)

    ctx = attention(q, k, v)                                      # (B*H, S, dh)
    ctx = ctx.reshape(batch, num_heads, seq, dh)
    ctx = jnp.transpose(ctx, (2, 0, 1, 3)).reshape(seq * batch, d_model)
    sa = linear(ctx, p["w_o"], p["b_o"])                          # out projection

    h1 = add_layernorm(x_rows, sa, p["ln1_g"], p["ln1_b"])        # post-norm 1
    ff = linear(h1, p["w_ff1"], p["b_ff1"], relu=True)
    ff = linear(ff, p["w_ff2"], p["b_ff2"])
    # post-norm 2 fused with the AttentionEncoder residual: x = att(x) + x
    return add_layernorm(h1, ff, p["ln2_g"], p["ln2_b"], residual=x_rows)


def attention_encoder_forward(x, pos, params, num_heads, n_layers):
    batch, seq, d_model = x.shape
    assert pos.shape == (batch, seq), "pe and x must have same batch and sequence size"
    x_rows = jnp.transpose(x, (1, 0, 2)).reshape(seq * batch, d_model)
    pos_rows = jnp.transpose(pos, (1, 0)).reshape(seq * batch, 1)
    h = pe_add(pos_rows, x_rows, params["pe_scale"], params["pe_phase"])
    for _ in range(n_layers):
        # nn.ModuleList([layer] * n_layers) repeats the SAME layer (shared weights)
        h = encoder_layer(h, params["layer"], seq, batch, num_heads)
    return jnp.transpose(h.reshape(seq, batch, d_model), (1, 0, 2))


# ---------------------------- params & reference ---------------------------- #

def init_params(key, d_model, hidden_channels):
    assert d_model % 2 == 0, "d_model must be even (as required by the torch module)"
    half = d_model // 2
    div = jnp.exp(jnp.arange(0, d_model, 2, dtype=jnp.float32)
                  * (-math.log(10000.0) / d_model)).reshape(1, half)
    pe_scale = jnp.concatenate([div, div], axis=1)                        # (1, D)
    pe_phase = jnp.concatenate(
        [jnp.zeros((1, half), jnp.float32),
         jnp.full((1, half), math.pi / 2.0, jnp.float32)], axis=1)        # (1, D)

    ks = jax.random.split(key, 8)

    def mat(k, fan_in, fan_out):
        return jax.random.normal(k, (fan_in, fan_out), jnp.float32) / math.sqrt(fan_in)

    def vec(k, n):
        return 0.02 * jax.random.normal(k, (1, n), jnp.float32)

    layer = dict(
        w_qkv=mat(ks[0], d_model, 3 * d_model), b_qkv=vec(ks[1], 3 * d_model),
        w_o=mat(ks[2], d_model, d_model),       b_o=vec(ks[3], d_model),
        w_ff1=mat(ks[4], d_model, hidden_channels), b_ff1=vec(ks[5], hidden_channels),
        w_ff2=mat(ks[6], hidden_channels, d_model), b_ff2=vec(ks[7], d_model),
        ln1_g=jnp.ones((1, d_model), jnp.float32),
        ln1_b=jnp.zeros((1, d_model), jnp.float32),
        ln2_g=jnp.ones((1, d_model), jnp.float32),
        ln2_b=jnp.zeros((1, d_model), jnp.float32),
    )
    return dict(div_term=div, pe_scale=pe_scale, pe_phase=pe_phase, layer=layer)


def _layernorm_ref(x, g, b):
    mu = jnp.mean(x, axis=-1, keepdims=True)
    var = jnp.mean((x - mu) ** 2, axis=-1, keepdims=True)
    return (x - mu) * lax.rsqrt(var + _LN_EPS) * g + b


def reference_forward(x, pos, params, num_heads, n_layers):
    batch, seq, d_model = x.shape
    dh = d_model // num_heads
    div = params["div_term"][0]
    xs = jnp.transpose(x, (1, 0, 2))
    ps = jnp.transpose(pos, (1, 0))
    prod = ps[..., None] * div
    pe = jnp.concatenate([jnp.sin(prod), jnp.cos(prod)], axis=-1)
    h = (xs + pe).reshape(seq * batch, d_model)
    p = params["layer"]
    for _ in range(n_layers):
        qkv = h @ p["w_qkv"] + p["b_qkv"]
        qkv = qkv.reshape(seq, batch, 3, num_heads, dh)
        qkv = jnp.transpose(qkv, (2, 1, 3, 0, 4))
        q, k, v = qkv[0], qkv[1], qkv[2]                    # (B, H, S, dh)
        s = jnp.einsum("bhqd,bhkd->bhqk", q, k) / math.sqrt(dh)
        a = jax.nn.softmax(s, axis=-1)
        o = jnp.einsum("bhqk,bhkd->bhqd", a, v)
        o = jnp.transpose(o, (2, 0, 1, 3)).reshape(seq * batch, d_model)
        sa = o @ p["w_o"] + p["b_o"]
        h1 = _layernorm_ref(h + sa, p["ln1_g"], p["ln1_b"])
        ff = jnp.maximum(h1 @ p["w_ff1"] + p["b_ff1"], 0.0) @ p["w_ff2"] + p["b_ff2"]
        h = _layernorm_ref(h1 + ff, p["ln2_g"], p["ln2_b"]) + h
    return jnp.transpose(h.reshape(seq, batch, d_model), (1, 0, 2))


if __name__ == "__main__":
    batch, seq = 2, 8
    d_model, hidden, num_heads, n_layers = 32, 64, 4, 2

    key = jax.random.PRNGKey(0)
    kx, kp, kw = jax.random.split(key, 3)
    x = jax.random.normal(kx, (batch, seq, d_model), jnp.float32)
    pos = jax.random.uniform(kp, (batch, seq), jnp.float32) * 100.0
    params = init_params(kw, d_model, hidden)

    # Positional-encoding kernel check (no matmuls -> tight tolerance).
    pos_rows = jnp.transpose(pos, (1, 0)).reshape(seq * batch, 1)
    pe = pe_add(pos_rows, jnp.zeros((seq * batch, d_model), jnp.float32),
                params["pe_scale"], params["pe_phase"])
    prod = pos_rows * params["div_term"]
    pe_ref = jnp.concatenate([jnp.sin(prod), jnp.cos(prod)], axis=-1)
    assert jnp.allclose(pe, pe_ref, atol=1e-4, rtol=1e-4)

    # Full AttentionEncoder forward against a pure-JAX reference.
    out = attention_encoder_forward(x, pos, params, num_heads, n_layers)
    out = jax.block_until_ready(out)
    ref = reference_forward(x, pos, params, num_heads, n_layers)
    assert out.shape == (batch, seq, d_model)
    # MXU (kernel) vs XLA (reference) f32 matmuls may differ at reduced-precision
    # pass granularity; loose tolerance still catches layout/semantics bugs.
    assert jnp.allclose(out, ref, atol=5e-2, rtol=5e-2)

    print("KERNEL_OK")
</pallas_src>

<mosaic_0001>
module attributes {stable_mosaic.version = 11 : i64} {
  func.func @_pe_add_kernel(%arg0: i32, %arg1: memref<16x1xf32, #tpu.memory_space<vmem>>, %arg2: memref<16x32xf32, #tpu.memory_space<vmem>>, %arg3: memref<1x32xf32, #tpu.memory_space<vmem>>, %arg4: memref<1x32xf32, #tpu.memory_space<vmem>>, %arg5: memref<16x32xf32, #tpu.memory_space<vmem>>) attributes {dimension_semantics = [#tpu.dimension_semantics<parallel>], iteration_bounds = array<i64: 1>, scalar_prefetch = 0 : i64, scratch_operands = 0 : i64, tpu.core_type = #tpu.core_type<tc>, window_params = [{transform_indices = @transform_0, window_bounds = array<i64: 16, 1>}, {transform_indices = @transform_1, window_bounds = array<i64: 16, 32>}, {pipeline_mode = #tpu.pipeline_mode<synchronous>, transform_indices = @transform_2, window_bounds = array<i64: 1, 32>}, {pipeline_mode = #tpu.pipeline_mode<synchronous>, transform_indices = @transform_3, window_bounds = array<i64: 1, 32>}, {transform_indices = @transform_4, window_bounds = array<i64: 16, 32>}]} {
    %c0 = arith.constant 0 : index
    %c0_0 = arith.constant 0 : index
    %0 = vector.load %arg1[%c0, %c0_0] : memref<16x1xf32, #tpu.memory_space<vmem>>, vector<16x1xf32>
    %c0_1 = arith.constant 0 : index
    %c0_2 = arith.constant 0 : index
    %1 = vector.load %arg3[%c0_1, %c0_2] : memref<1x32xf32, #tpu.memory_space<vmem>>, vector<1x32xf32>
    %2 = vector.broadcast %0 : vector<16x1xf32> to vector<16x32xf32>
    %3 = vector.broadcast %1 : vector<1x32xf32> to vector<16x32xf32>
    %4 = arith.mulf %2, %3 : vector<16x32xf32>
    %c0_3 = arith.constant 0 : index
    %c0_4 = arith.constant 0 : index
    %5 = vector.load %arg4[%c0_3, %c0_4] : memref<1x32xf32, #tpu.memory_space<vmem>>, vector<1x32xf32>
    %6 = vector.broadcast %5 : vector<1x32xf32> to vector<16x32xf32>
    %7 = arith.addf %4, %6 : vector<16x32xf32>
    %c0_5 = arith.constant 0 : index
    %c0_6 = arith.constant 0 : index
    %8 = vector.load %arg2[%c0_5, %c0_6] : memref<16x32xf32, #tpu.memory_space<vmem>>, vector<16x32xf32>
    %9 = math.sin %7 : vector<16x32xf32>
    %10 = arith.addf %8, %9 : vector<16x32xf32>
    %c0_7 = arith.constant 0 : index
    %c0_8 = arith.constant 0 : index
    %11 = vector.load %arg5[%c0_7, %c0_8] : memref<16x32xf32, #tpu.memory_space<vmem>>, vector<16x32xf32>
    tpu.vector_store %arg5[%c0_7, %c0_8], %10 {strides = array<i32>} : memref<16x32xf32, #tpu.memory_space<vmem>>, vector<16x32xf32>,
    return
  }
  func.func @transform_0(%arg0: i32) -> (i32, i32) {
    %c0_i32 = arith.constant 0 : i32
    %c0_i32_0 = arith.constant 0 : i32
    return %arg0, %c0_i32 : i32, i32
  }
  func.func @transform_1(%arg0: i32) -> (i32, i32) {
    %c0_i32 = arith.constant 0 : i32
    %c0_i32_0 = arith.constant 0 : i32
    return %arg0, %c0_i32 : i32, i32
  }
  func.func @transform_2(%arg0: i32) -> (i32, i32) {
    %c0_i32 = arith.constant 0 : i32
    %c0_i32_0 = arith.constant 0 : i32
    %c0_i32_1 = arith.constant 0 : i32
    return %c0_i32, %c0_i32_0 : i32, i32
  }
  func.func @transform_3(%arg0: i32) -> (i32, i32) {
    %c0_i32 = arith.constant 0 : i32
    %c0_i32_0 = arith.constant 0 : i32
    %c0_i32_1 = arith.constant 0 : i32
    return %c0_i32, %c0_i32_0 : i32, i32
  }
  func.func @transform_4(%arg0: i32) -> (i32, i32) {
    %c0_i32 = arith.constant 0 : i32
    %c0_i32_0 = arith.constant 0 : i32
    return %arg0, %c0_i32 : i32, i32
  }
}

</mosaic_0001>

<bundles_post_ra>
// kernel: tpu_custom_call.1
= control target key start
LH: loop header
LB: loop body
LE: loop exit
PB: predicated region body
PF: predicated region fallthrough
CT: control target
= control target key end

     0   :  { %v340_v1 = vmov 0   ;;  %s475_s0 = inlined_call_operand.vmem [shape: f32[16,1], index: 0, kind: input, shape index: {}]   ;;  %s476_s1 = inlined_call_operand.vmem [shape: f32[16,32], index: 1, kind: input, shape index: {}]   ;;  %s477_s2 = inlined_call_operand.vmem [shape: f32[1,32], index: 2, kind: input, shape index: {}]   ;;  %s478_s3 = inlined_call_operand.vmem [shape: f32[1,32], index: 3, kind: input, shape index: {}]   ;;  %s479_s4 = inlined_call_operand.hbm [shape: f32[16,32], index: 4, kind: output, shape index: {}]  }
   0x1   :  { %v18_v0 = vld [vmem:[%s475_s0] sm:$0xff]  ;;  %307 = vset.pattern.permute.xlu0 %v340_v1  ;;  %v19_v2 = vld [vmem:[%s475_s0 + $0x8] sm:$0xff] }
   0x2   :  { %23 = vperm.xlu0 %307, %v18_v0  }
   0x3   :  { %9 = vsyncpa [#allocation3], 0  ;;  %v279_v3 = vld [vmem:[%s477_s2] ss:$0 sm:$0xff]  ;;  %v341_v27 = vmov 683565275  }
   0x4   :  { %v280_v4 = vld [vmem:[%s478_s3] ss:$0 sm:$0xff]  ;;  %v342_v31 = vmov 2475754826   ;;  %v343_v33 = vmov 2131351028  }
   0x5   :  { %v344_v35 = vmov 2102212464   ;;  %v345_v37 = vmov 920167782   ;;  %v346_v44 = vmov 1326507024  }
   0x6   :  { %28 = vperm.xlu0 %307, %v19_v2   ;;  %s347_s24 = smov [#allocation2]  }
   0x7   :  { %s268_s25 = sshll.u32 %s347_s24, 4  ;;  %s269_s25 = int_to_ptr.vmem [resolvable:$true] %s268_s25 }
   0x8   :  { %s316_s26 = scalar_lea.vmem %s269_s25, 256  ;;  %p321_p1 = scmp.lt.s32.totalorder %s269_s25, %s269_s25 }
   0x9   :  { %p317_p0 = scmp.ne.s32.totalorder %s269_s25, %s316_s26  ;;  %p322_p2 = scmp.lt.s32.totalorder %s316_s26, %s316_s26 }
   0xb   :  { %p323_p3 = por %p322_p2, %p321_p1 }
   0xd   :  { %p324_p4 = pnand %p323_p3, %p317_p0 }
  0x81   :  { %v24_v5 = vpop.permute.xlu0 %23 }
  0x82   :  { %v37_v6 = vmul.f32 %v279_v3, %v24_v5 }
  0x84   :  { %v387_v7 = vadd.f32 %v280_v4, %v37_v6 }
  0x85   :  { %v29_v8 = vpop.permute.xlu0 %28 }
  0x86   :  { %v50_v9 = vand.u32 2147483647, %v387_v7  ;;  %v53_v10 = vand.u32 2139095040, %v387_v7  ;;  %v38_v11 = vmul.f32 %v279_v3, %v29_v8  ;;  %vm52_vm14 = vcmp.lt.s32.totalorder %v387_v7, 0 }
  0x88   :  { %v54_v12 = vshrl.u32 %v53_v10, 23  ;;  %v391_v13 = vadd.f32 %v280_v4, %v38_v11  ;;  %v57_v14 = vand.u32 8388607, %v50_v9  ;;  %vm51_vm15 = vcmp.le.f32.partialorder %v50_v9, 0.7853982 }
  0x8a   :  { %v281_v15 = vadd.s32 4294967169, %v54_v12  ;;  %v157_v16 = vand.u32 2139095040, %v391_v13  ;;  %v58_v18 = vor.u32 8388608, %v57_v14  ;;  %v154_v20 = vand.u32 2147483647, %v391_v13 }
  0x8c   :  { %v60_v17 = vadd.s32 1, %v281_v15  ;;  %v158_v19 = vshrl.u32 %v157_v16, 23  ;;  %v397_v25 = vshll.u32 %v58_v18, 8  ;;  %v161_v29 = vand.u32 8388607, %v154_v20 }
  0x8e   :  { %vm61_vm0 = vcmp.gt.s32.totalorder %v60_v17, 0  ;;  %v285_v22 = vadd.s32 4294967169, %v158_v19  ;;  %v162_v59 = vor.u32 8388608, %v161_v29 }
  0x8f   :  { %v62_v21 = vsel %vm61_vm0, %v60_v17, 0  ;;  %vm156_vm0 = vcmp.lt.s32.totalorder %v391_v13, 0 }
  0x90   :  { %v63_v23 = vshrl.u32 %v62_v21, 5  ;;  %v64_v24 = vand.u32 31, %v62_v21  ;;  %v164_v30 = vadd.s32 1, %v285_v22  ;;  %v202_v10 = vshll.u32 %v162_v59, 8 }
  0x92   :  { %v65_v26 = vsub.s32 32, %v64_v24  ;;  %v67_v28 = vshll.u32 %v341_v27, %v64_v24  ;;  %v70_v32 = vshll.u32 %v342_v31, %v64_v24  ;;  %v73_v34 = vshll.u32 %v343_v33, %v64_v24 }
  0x93   :  { %v76_v36 = vshll.u32 %v344_v35, %v64_v24  ;;  %v79_v38 = vshll.u32 %v345_v37, %v64_v24  ;;  %vm82_vm1 = vcmp.lt.s32.totalorder %v63_v23, 1  ;;  %vm84_vm2 = vcmp.lt.s32.totalorder %v63_v23, 3 }
  0x94   :  { %v68_v39 = vshrl.u32 %v342_v31, %v65_v26  ;;  %v71_v40 = vshrl.u32 %v343_v33, %v65_v26  ;;  %v74_v41 = vshrl.u32 %v344_v35, %v65_v26  ;;  %v66_v42 = vshrl.u32 %v341_v27, %v65_v26 }
  0x95   :  { %v77_v43 = vshrl.u32 %v345_v37, %v65_v26  ;;  %v80_v45 = vshrl.u32 %v346_v44, %v65_v26  ;;  %vm165_vm3 = vcmp.gt.s32.totalorder %v164_v30, 0  ;;  %vm85_vm4 = vcmp.lt.s32.totalorder %v63_v23, 4 }
  0x96   :  { %v69_v46 = vor.u32 %v68_v39, %v67_v28  ;;  %v72_v47 = vor.u32 %v71_v40, %v70_v32  ;;  %v75_v48 = vor.u32 %v74_v41, %v73_v34  ;;  %v166_v51 = vsel %vm165_vm3, %v164_v30, 0 }
  0x97   :  { %v78_v49 = vor.u32 %v77_v43, %v76_v36  ;;  %v81_v50 = vor.u32 %v80_v45, %v79_v38  ;;  %vm83_vm5 = vcmp.lt.s32.totalorder %v63_v23, 2  ;;  %v168_v62 = vand.u32 31, %v166_v51 }
  0x98   :  { %v86_v52 = vsel %vm82_vm1, %v66_v42, %v69_v46  ;;  %v87_v53 = vsel %vm85_vm4, %v75_v48, 2102212464  ;;  %v90_v54 = vsel %vm82_vm1, %v69_v46, %v72_v47  ;;  %v94_v55 = vsel %vm82_vm1, %v72_v47, %v75_v48 }
  0x99   :  { %v88_v56 = vsel %vm84_vm2, %v72_v47, %v87_v53  ;;  %v91_v57 = vsel %vm85_vm4, %v78_v49, 920167782  ;;  %v95_v58 = vsel %vm85_vm4, %v81_v50, 1326507024  ;;  %v167_v6 = vshrl.u32 %v166_v51, 5 }
  0x9a   :  { %v92_v60 = vsel %vm84_vm2, %v75_v48, %v91_v57  ;;  %v96_v61 = vsel %vm84_vm2, %v78_v49, %v95_v58  ;;  %v89_v63 = vsel %vm83_vm5, %v86_v52, %v88_v56  ;;  %v169_v8 = vsub.s32 32, %v168_v62 }
  0x9b   :  { %v93_v0 = vsel %vm83_vm5, %v90_v54, %v92_v60  ;;  %v97_v1 = vsel %vm83_vm5, %v94_v55, %v96_v61  ;;  %v105_v11 = vmul.u32 %v397_v25, %v89_v63  ;;  %v171_v12 = vshll.u32 %v341_v27, %v168_v62 }
  0x9c   :  { %v410_v2 = vmul.u32.u64.low %v397_v25, %v97_v1  ;;  %v411_v3 = vmul.u32.u64.high %v397_v25, %v97_v1, %v410_v2  ;;  %v414_v4 = vmul.u32.u64.low %v397_v25, %v93_v0  ;;  %v415_v5 = vmul.u32.u64.high %v397_v25, %v93_v0, %v414_v4 }
  0x9d   :  { %v174_v14 = vshll.u32 %v342_v31, %v168_v62  ;;  %v177_v15 = vshll.u32 %v343_v33, %v168_v62  ;;  %v172_v16 = vshrl.u32 %v342_v31, %v169_v8  ;;  %v175_v17 = vshrl.u32 %v343_v33, %v169_v8 }
  0x9e   :  { %v178_v18 = vshrl.u32 %v344_v35, %v169_v8  ;;  %v180_v19 = vshll.u32 %v344_v35, %v168_v62  ;;  %vm107_vm6 = vc.u32 %v411_v3, %v414_v4  ;;  %v108_v21 = vadd.s32 1, %v415_v5 }
  0x9f   :  { %v181_v22 = vshrl.u32 %v345_v37, %v169_v8  ;;  %v183_v23 = vshll.u32 %v345_v37, %v168_v62  ;;  %v173_v24 = vor.u32 %v172_v16, %v171_v12  ;;  %v176_v26 = vor.u32 %v175_v17, %v174_v14 }
  0xa0   :  { %v179_v28 = vor.u32 %v178_v18, %v177_v15  ;;  %v184_v29 = vshrl.u32 %v346_v44, %v169_v8  ;;  %v109_v25 = vsel %vm107_vm6, %v108_v21, %v415_v5  ;;  %vm186_vm7 = vcmp.lt.s32.totalorder %v167_v6, 1 }
  0xa1   :  { %v182_v30 = vor.u32 %v181_v22, %v180_v19  ;;  %vm189_vm8 = vcmp.lt.s32.totalorder %v167_v6, 4  ;;  %v110_v31 = vadd.s32 %v109_v25, %v105_v11  ;;  %vm188_vm9 = vcmp.lt.s32.totalorder %v167_v6, 3 }
  0xa2   :  { %v185_v32 = vor.u32 %v184_v29, %v183_v23  ;;  %v191_v33 = vsel %vm189_vm8, %v179_v28, 2102212464  ;;  %v170_v34 = vshrl.u32 %v341_v27, %v169_v8  ;;  %v194_v35 = vsel %vm186_vm7, %v173_v24, %v176_v26 }
  0xa3   :  { %v195_v36 = vsel %vm189_vm8, %v182_v30, 920167782  ;;  %v198_v38 = vsel %vm186_vm7, %v176_v26, %v179_v28  ;;  %v111_v39 = vadd.s32 536870912, %v110_v31  ;;  %vm187_vm10 = vcmp.lt.s32.totalorder %v167_v6, 2 }
  0xa4   :  { %v196_v37 = vsel %vm188_vm9, %v179_v28, %v195_v36  ;;  %v199_v40 = vsel %vm189_vm8, %v185_v32, 1326507024  ;;  %v190_v41 = vsel %vm186_vm7, %v170_v34, %v173_v24  ;;  %v192_v42 = vsel %vm188_vm9, %v176_v26, %v191_v33 }
  0xa5   :  { %v197_v43 = vsel %vm187_vm10, %v194_v35, %v196_v37  ;;  %v200_v44 = vsel %vm188_vm9, %v182_v30, %v199_v40  ;;  %v112_v45 = vshrl.u32 %v111_v39, 30  ;;  %v193_v51 = vsel %vm187_vm10, %v190_v41, %v192_v42 }
  0xa6   :  { %v201_v46 = vsel %vm187_vm10, %v198_v38, %v200_v44  ;;  %v425_v47 = vmul.u32.u64.low %v202_v10, %v197_v43  ;;  %v426_v48 = vmul.u32.u64.high %v202_v10, %v197_v43, %v425_v47  ;;  %v209_v54 = vmul.u32 %v202_v10, %v193_v51 }
  0xa7   :  { %v428_v49 = vmul.u32.u64.low %v202_v10, %v201_v46  ;;  %v429_v50 = vmul.u32.u64.high %v202_v10, %v201_v46, %v428_v49  ;;  %v113_v27 = vshll.u32 %v112_v45, 30  ;;  %v106_v2 = vadd.s32 %v414_v4, %v411_v3 }
  0xa8   :  { %v212_v53 = vadd.s32 1, %v426_v48  ;;  %v136_v24 = vsub.s32 4, %v112_v45  ;;  %vm444_vm1 = vcmp.le.f32.partialorder %v154_v20, 0.7853982  ;;  %vm142_vm5 = vweird.f32 %v387_v7 }
  0xa9   :  { %v114_v52 = vsub.s32 %v110_v31, %v113_v27  ;;  %vm211_vm11 = vc.u32 %v429_v50, %v425_v47  ;;  %v210_v3 = vadd.s32 %v425_v47, %v429_v50  ;;  %vm260_vm6 = vcmask 261120  }
  0xaa   :  { %v213_v56 = vsel %vm211_vm11, %v212_v53, %v426_v48  ;;  %v137_v33 = vsel %vm52_vm14, %v136_v24, %v112_v45  ;;  %v48_v53 = vld [vmem:[%s476_s1] sm:$0xff]  ;;  %vm246_vm10 = vweird.f32 %v391_v13 }
  0xab   :  { %v116_v55 = vsub.s32 0, %v114_v52  ;;  %v214_v57 = vadd.s32 %v213_v56, %v209_v54  ;;  %v139_v38 = vsel %vm51_vm15, 0, %v137_v33 }
  0xac   :  { %v143_v41 = vadd.s32 3, %v139_v38 }
  0xad   :  { %v282_v58 = vmin.u32 %v116_v55, %v114_v52  ;;  %v215_v59 = vadd.s32 536870912, %v214_v57 }
  0xae   :  { %v144_v46 = vand.u32 3, %v143_v41 }
  0xaf   :  { %v118_v60 = vclz %v282_v58  ;;  %v216_v61 = vshrl.u32 %v215_v59, 30 }
  0xb0   :  { %vm149_vm2 = vcmp.eq.s32.totalorder %v144_v46, 2  ;;  %vm146_vm3 = vcmp.eq.s32.totalorder %v144_v46, 0  ;;  %vm145_vm4 = vcmp.lt.s32.totalorder %v144_v46, 2 }
  0xb1   :  { %v283_v62 = vadd.s32 4294967294, %v118_v60  ;;  %v217_v63 = vshll.u32 %v216_v61, 30  ;;  %v240_v43 = vsub.s32 4, %v216_v61 }
  0xb3   :  { %vm284_vm12 = vcmp.lt.s32.totalorder %v283_v62, 0  ;;  %v218_v1 = vsub.s32 %v214_v57, %v217_v63  ;;  %v241_v47 = vsel %vm156_vm0, %v240_v43, %v216_v61 }
  0xb4   :  { %v121_v0 = vsel %vm284_vm12, 0, %v283_v62  ;;  %v243_v51 = vsel %vm444_vm1, 0, %v241_v47 }
  0xb5   :  { %v122_v5 = vsub.s32 32, %v121_v0  ;;  %v126_v6 = vsub.s32 4294967266, %v121_v0  ;;  %v220_v8 = vsub.s32 0, %v218_v1  ;;  %v123_v10 = vshll.u32 %v114_v52, %v121_v0 }
  0xb6   :  { %v247_v55 = vadd.s32 3, %v243_v51 }
  0xb7   :  { %v124_v11 = vshrl.u32 %v106_v2, %v122_v5  ;;  %v127_v12 = vadd.s32 127, %v126_v6  ;;  %v286_v14 = vmin.u32 %v220_v8, %v218_v1 }
  0xb8   :  { %v248_v59 = vand.u32 3, %v247_v55 }
  0xb9   :  { %v125_v15 = vor.u32 %v124_v11, %v123_v10  ;;  %v128_v16 = vshll.u32 %v127_v12, 23  ;;  %v222_v17 = vclz %v286_v14 }
  0xba   :  { %vm253_vm7 = vcmp.eq.s32.totalorder %v248_v59, 2  ;;  %vm250_vm8 = vcmp.eq.s32.totalorder %v248_v59, 0  ;;  %vm249_vm9 = vcmp.lt.s32.totalorder %v248_v59, 2 }
  0xbb   :  { %v129_v18 = vor.u32 4788187, %v128_v16  ;;  %v287_v19 = vadd.s32 4294967294, %v222_v17  ;;  %v132_v22 = vcvt.s32.f32 %v125_v15 }
  0xbd   :  { %v130_v21 = vand.u32 2147483647, %v129_v18  ;;  %vm288_vm13 = vcmp.lt.s32.totalorder %v287_v19, 0 }
  0xbe   :  { %v225_v26 = vsel %vm288_vm13, 0, %v287_v19 }
  0xbf   :  { %v133_v23 = vmul.f32 %v132_v22, %v130_v21  ;;  %v226_v4 = vsub.s32 32, %v225_v26  ;;  %v230_v28 = vsub.s32 4294967266, %v225_v26  ;;  %v227_v25 = vshll.u32 %v218_v1, %v225_v26  ;;  %v49_v1 = vld [vmem:[%s476_s1 + $0x8] sm:$0xff] }
  0xc1   :  { %v134_v29 = vxor.u32 2147483648, %v133_v23  ;;  %v228_v30 = vshrl.u32 %v210_v3, %v226_v4  ;;  %v231_v31 = vadd.s32 127, %v230_v28 }
  0xc3   :  { %v135_v32 = vsel %vm52_vm14, %v134_v29, %v133_v23  ;;  %v229_v35 = vor.u32 %v228_v30, %v227_v25  ;;  %v232_v36 = vshll.u32 %v231_v31, 23 }
  0xc4   :  { %v138_v34 = vsel %vm51_vm15, %v387_v7, %v135_v32 }
  0xc5   :  { %308 = vcosq.f32 %v138_v34  ;;  %v233_v39 = vor.u32 4788187, %v232_v36  ;;  %v236_v40 = vcvt.s32.f32 %v229_v35 }
  0xc6   :  { %310 = vsinq.f32 %v138_v34 }
  0xc7   :  { %v234_v37 = vand.u32 2147483647, %v233_v39 }
  0xc9   :  { %v237_v42 = vmul.f32 %v236_v40, %v234_v37 }
  0xcb   :  { %v238_v44 = vxor.u32 2147483648, %v237_v42 }
  0xcd   :  { %v239_v45 = vsel %vm156_vm0, %v238_v44, %v237_v42 }
  0xce   :  { %v242_v49 = vsel %vm444_vm1, %v391_v13, %v239_v45 }
  0xcf   :  { %v309_v48 = vpop.eup %308  ;;  %312 = vcosq.f32 %v242_v49 }
  0xd0   :  { %v311_v50 = vpop.eup %310  ;;  %v150_v27 = vxor.u32 2147483648, %v309_v48  ;;  %314 = vsinq.f32 %v242_v49 }
  0xd1   :  { %v147_v52 = vxor.u32 2147483648, %v311_v50 }
  0xd2   :  { %v151_v20 = vsel %vm149_vm2, %v150_v27, %v311_v50 }
  0xd3   :  { %v148_v54 = vsel %vm146_vm3, %v309_v48, %v147_v52 }
  0xd4   :  { %v152_v56 = vsel %vm145_vm4, %v148_v54, %v151_v20 }
  0xd5   :  { %v153_v57 = vsel %vm142_vm5, nan, %v152_v56 }
  0xd6   :  { %v258_v58 = vadd.f32 %v153_v57, %v48_v53 }
  0xd8   :  { %261 = vst.msk [vmem:[#allocation2] sm:$0xff] %vm260_vm6, %v258_v58 }
  0xd9   :  { %v313_v60 = vpop.eup %312 }
  0xda   :  { %v315_v61 = vpop.eup %314  ;;  %v254_v62 = vxor.u32 2147483648, %v313_v60 }
  0xdb   :  { %v251_v63 = vxor.u32 2147483648, %v315_v61 }
  0xdc   :  { %v255_v0 = vsel %vm253_vm7, %v254_v62, %v315_v61 }
  0xdd   :  { %v252_v7 = vsel %vm250_vm8, %v313_v60, %v251_v63 }
  0xde   :  { %v256_v2 = vsel %vm249_vm9, %v252_v7, %v255_v0 }
  0xdf   :  { %v257_v5 = vsel %vm246_vm10, nan, %v256_v2 }
  0xe0   :  { %v259_v6 = vadd.f32 %v257_v5, %v49_v1 }
  0xe2   :  { %262 = vst.msk [vmem:[#allocation2 + $0x8] sm:$0xff] %vm260_vm6, %v259_v6 }
  0xe3   :  { %327 = shalt.err (!%p324_p4)
}
  0xe4   :  { %s328_s28 = scalar_lea.hbm %s479_s4, 256 }
  0xe5   :  { %p329_p5 = scmp.ne.s32.totalorder %s479_s4, %s328_s28  ;;  %p332_p6 = scmp.lt.u32.totalorder %s328_s28, %s479_s4 }
  0xe7   :  { %p334_p7 = pnand %p332_p6, %p329_p5 }
  0xe9   :  { %337 = shalt.err (!%p334_p7)
}
  0xea   :  { %s348_s7 = smov 128   ;;  %s349_s8 = smov 8  }
  0xeb   :  { %274 = dma.vmem_to_hbm [thread:$0]  %s269_s25, 256, %s479_s4, [#allocation3], %s348_s7, %s348_s7, %s349_s8  }
  0xec   :  { %338 = dma.done.wait [#allocation3], 256  }
  0xed   :  { %339 = vsyncadd [#allocation3], 4294967040 }
  0xee   :  { %278 = vsyncpa [#allocation3], 1 }

</bundles_post_ra>
